<compile_context>
chip_gen: v6e
topology: v6e:2x2x1
jax: 0.10.0
libtpu: 0.0.40
codegen_flags: <defaults>
</compile_context>

<pallas_src>
import functools

import jax
import jax.numpy as jnp
from jax.experimental import pallas as pl
from jax.experimental.pallas import tpu as pltpu


def _sigmoid(z):
    # exp lands on the EUP; exact reciprocal keeps tight tolerance.
    # (pl.reciprocal(..., approx=True) is available if ~1e-3 rel. error is OK.)
    return pl.reciprocal(1.0 + jnp.exp(-z))


def _se_kernel(x_ref, w1_ref, b1_ref, w2_ref, b2_ref, o_ref, *, activation):
    # x_ref : (1, C, HW) block for one batch element (C on sublanes, HW on lanes)
    # w1_ref: (Ch, C)   b1_ref: (Ch, 1)   w2_ref: (C, Ch)   b2_ref: (C, 1)
    # o_ref : (1, C, HW)
    x = x_ref[0]                                           # (C, HW)
    hw = x.shape[-1]

    # ---- squeeze: mean over spatial; keepdims so C stays on sublanes ----
    y = jnp.sum(x.astype(jnp.float32), axis=-1, keepdims=True) * (1.0 / hw)  # (C, 1)

    # ---- excitation MLP in column form (no lane<->sublane relayout) ----
    h = jnp.dot(w1_ref[...], y, preferred_element_type=jnp.float32) + b1_ref[...]
    if activation == "swish":
        h = h * _sigmoid(h)
    else:  # "relu"
        h = jnp.maximum(h, 0.0)
    z = jnp.dot(w2_ref[...], h, preferred_element_type=jnp.float32) + b2_ref[...]
    s = _sigmoid(z)                                        # (C, 1) gate

    # ---- scale: re-read x from VMEM; (C, 1) broadcasts across lanes ----
    o_ref[0] = x_ref[0] * s.astype(o_ref.dtype)


def squeeze_excitation(x_nchw, w1, b1, w2, b2, *, activation="swish"):
    """SE forward. x_nchw: (B, C, H, W). PyTorch nn.Linear weight layout:
    w1: (C//r, C), b1: (C//r,), w2: (C, C//r), b2: (C,)."""
    B, C, H, W = x_nchw.shape
    Ch = w1.shape[0]
    HW = H * W

    x = x_nchw.reshape(B, C, HW)
    w1f = w1.astype(jnp.float32)                 # (Ch, C) — used as-is (column MLP)
    w2f = w2.astype(jnp.float32)                 # (C, Ch)
    b1c = b1.astype(jnp.float32).reshape(Ch, 1)  # column biases, sublane-oriented
    b2c = b2.astype(jnp.float32).reshape(C, 1)

    # VMEM budget: double-buffered x + out blocks, resident params, slack.
    itemsize = jnp.dtype(x.dtype).itemsize
    block_bytes = C * HW * itemsize
    param_bytes = 4 * (w1f.size + w2f.size + b1c.size + b2c.size)
    vmem_limit = int(min(max(4 * block_bytes + param_bytes + (2 << 20), 16 << 20),
                         96 << 20))

    kernel = functools.partial(_se_kernel, activation=activation)
    out = pl.pallas_call(
        kernel,
        out_shape=jax.ShapeDtypeStruct((B, C, HW), x.dtype),
        grid_spec=pltpu.PrefetchScalarGridSpec(
            num_scalar_prefetch=0,
            grid=(B,),
            in_specs=[
                pl.BlockSpec((1, C, HW), lambda b: (b, 0, 0)),  # streamed per batch
                pl.BlockSpec((Ch, C), lambda b: (0, 0)),        # resident weights
                pl.BlockSpec((Ch, 1), lambda b: (0, 0)),        # resident bias
                pl.BlockSpec((C, Ch), lambda b: (0, 0)),        # resident weights
                pl.BlockSpec((C, 1), lambda b: (0, 0)),         # resident bias
            ],
            out_specs=pl.BlockSpec((1, C, HW), lambda b: (b, 0, 0)),
        ),
        compiler_params=pltpu.CompilerParams(
            dimension_semantics=("parallel",),   # megacore sharding on v7x
            vmem_limit_bytes=vmem_limit,
        ),
    )(x, w1f, b1c, w2f, b2c)
    return out.reshape(B, C, H, W)


def _reference(x_nchw, w1, b1, w2, b2, activation="swish"):
    y = jnp.mean(x_nchw, axis=(2, 3))
    h = y @ w1.T + b1
    h = h * jax.nn.sigmoid(h) if activation == "swish" else jnp.maximum(h, 0.0)
    s = jax.nn.sigmoid(h @ w2.T + b2)
    return x_nchw * s[:, :, None, None]


if __name__ == "__main__":
    B, C, H, W = 2, 64, 16, 16
    reduction = 16
    Ch = C // reduction

    key = jax.random.PRNGKey(0)
    kx, k1, k2, k3, k4 = jax.random.split(key, 5)

    x = jax.random.normal(kx, (B, C, H, W), dtype=jnp.float32)
    # deterministic synthetic parameters (PyTorch Linear weight layout)
    w1 = jax.random.normal(k1, (Ch, C), dtype=jnp.float32) * 0.1
    b1 = jax.random.normal(k2, (Ch,), dtype=jnp.float32) * 0.1
    w2 = jax.random.normal(k3, (C, Ch), dtype=jnp.float32) * 0.1
    b2 = jax.random.normal(k4, (C,), dtype=jnp.float32) * 0.1

    out = squeeze_excitation(x, w1, b1, w2, b2, activation="swish")
    out = jax.block_until_ready(out)

    ref = _reference(x, w1, b1, w2, b2, activation="swish")
    assert out.shape == (B, C, H, W)
    assert jnp.allclose(out, ref, atol=2e-5, rtol=2e-5), "mismatch vs reference"

    print("KERNEL_OK")
</pallas_src>

<mosaic_0001>
module attributes {stable_mosaic.version = 11 : i64} {
  func.func @_se_kernel(%arg0: i32, %arg1: memref<1x64x256xf32, #tpu.memory_space<vmem>>, %arg2: memref<4x64xf32, #tpu.memory_space<vmem>>, %arg3: memref<4x1xf32, #tpu.memory_space<vmem>>, %arg4: memref<64x4xf32, #tpu.memory_space<vmem>>, %arg5: memref<64x1xf32, #tpu.memory_space<vmem>>, %arg6: memref<1x64x256xf32, #tpu.memory_space<vmem>>) attributes {dimension_semantics = [#tpu.dimension_semantics<parallel>], iteration_bounds = array<i64: 2>, scalar_prefetch = 0 : i64, scratch_operands = 0 : i64, tpu.core_type = #tpu.core_type<tc>, window_params = [{transform_indices = @transform_0, window_bounds = array<i64: 1, 64, 256>}, {pipeline_mode = #tpu.pipeline_mode<synchronous>, transform_indices = @transform_1, window_bounds = array<i64: 4, 64>}, {pipeline_mode = #tpu.pipeline_mode<synchronous>, transform_indices = @transform_2, window_bounds = array<i64: 4, 1>}, {pipeline_mode = #tpu.pipeline_mode<synchronous>, transform_indices = @transform_3, window_bounds = array<i64: 64, 4>}, {pipeline_mode = #tpu.pipeline_mode<synchronous>, transform_indices = @transform_4, window_bounds = array<i64: 64, 1>}, {transform_indices = @transform_5, window_bounds = array<i64: 1, 64, 256>}]} {
    %c0 = arith.constant 0 : index
    %c0_0 = arith.constant 0 : index
    %c0_1 = arith.constant 0 : index
    %0 = vector.load %arg1[%c0, %c0_0, %c0_1] : memref<1x64x256xf32, #tpu.memory_space<vmem>>, vector<1x64x256xf32>
    %1 = vector.shape_cast %0 : vector<1x64x256xf32> to vector<64x256xf32>
    %cst = arith.constant dense<0.000000e+00> : vector<64xf32>
    %2 = vector.multi_reduction <add>, %1, %cst [1] : vector<64x256xf32> to vector<64xf32>
    %3 = vector.shape_cast %2 : vector<64xf32> to vector<64x1xf32>
    %cst_2 = arith.constant 3.906250e-03 : f32
    %4 = vector.broadcast %cst_2 : f32 to vector<64x1xf32>
    %5 = arith.mulf %3, %4 : vector<64x1xf32>
    %c0_3 = arith.constant 0 : index
    %c0_4 = arith.constant 0 : index
    %6 = vector.load %arg2[%c0_3, %c0_4] : memref<4x64xf32, #tpu.memory_space<vmem>>, vector<4x64xf32>
    %cst_5 = arith.constant dense<0.000000e+00> : vector<4x1xf32>
    %7 = tpu.matmul %6, %5, %cst_5 {dimension_numbers = #tpu.dot_dimension_numbers<[1], [0], [0], [1], [0, 0, 1, 1], [], []>} : vector<4x64xf32>, vector<64x1xf32>, vector<4x1xf32> -> vector<4x1xf32>
    %c0_6 = arith.constant 0 : index
    %c0_7 = arith.constant 0 : index
    %8 = vector.load %arg3[%c0_6, %c0_7] : memref<4x1xf32, #tpu.memory_space<vmem>>, vector<4x1xf32>
    %9 = arith.addf %7, %8 : vector<4x1xf32>
    %cst_8 = arith.constant 0.000000e+00 : f32
    %10 = vector.broadcast %cst_8 : f32 to vector<4x1xf32>
    %11 = arith.subf %10, %9 : vector<4x1xf32>
    %12 = math.exp %11 : vector<4x1xf32>
    %cst_9 = arith.constant 1.000000e+00 : f32
    %13 = vector.broadcast %cst_9 : f32 to vector<4x1xf32>
    %14 = arith.addf %13, %12 : vector<4x1xf32>
    %15 = tpu.reciprocal %14 : vector<4x1xf32> -> vector<4x1xf32>
    %16 = arith.mulf %9, %15 : vector<4x1xf32>
    %c0_10 = arith.constant 0 : index
    %c0_11 = arith.constant 0 : index
    %17 = vector.load %arg4[%c0_10, %c0_11] : memref<64x4xf32, #tpu.memory_space<vmem>>, vector<64x4xf32>
    %cst_12 = arith.constant dense<0.000000e+00> : vector<64x1xf32>
    %18 = tpu.matmul %17, %16, %cst_12 {dimension_numbers = #tpu.dot_dimension_numbers<[1], [0], [0], [1], [0, 0, 1, 1], [], []>} : vector<64x4xf32>, vector<4x1xf32>, vector<64x1xf32> -> vector<64x1xf32>
    %c0_13 = arith.constant 0 : index
    %c0_14 = arith.constant 0 : index
    %19 = vector.load %arg5[%c0_13, %c0_14] : memref<64x1xf32, #tpu.memory_space<vmem>>, vector<64x1xf32>
    %20 = arith.addf %18, %19 : vector<64x1xf32>
    %cst_15 = arith.constant 0.000000e+00 : f32
    %21 = vector.broadcast %cst_15 : f32 to vector<64x1xf32>
    %22 = arith.subf %21, %20 : vector<64x1xf32>
    %23 = math.exp %22 : vector<64x1xf32>
    %cst_16 = arith.constant 1.000000e+00 : f32
    %24 = vector.broadcast %cst_16 : f32 to vector<64x1xf32>
    %25 = arith.addf %24, %23 : vector<64x1xf32>
    %26 = tpu.reciprocal %25 : vector<64x1xf32> -> vector<64x1xf32>
    %c0_17 = arith.constant 0 : index
    %c0_18 = arith.constant 0 : index
    %c0_19 = arith.constant 0 : index
    %27 = vector.load %arg1[%c0_17, %c0_18, %c0_19] : memref<1x64x256xf32, #tpu.memory_space<vmem>>, vector<1x64x256xf32>
    %28 = vector.shape_cast %27 : vector<1x64x256xf32> to vector<64x256xf32>
    %29 = vector.broadcast %26 : vector<64x1xf32> to vector<64x256xf32>
    %30 = arith.mulf %28, %29 : vector<64x256xf32>
    %c0_20 = arith.constant 0 : index
    %c0_21 = arith.constant 0 : index
    %c0_22 = arith.constant 0 : index
    %31 = vector.load %arg6[%c0_20, %c0_21, %c0_22] : memref<1x64x256xf32, #tpu.memory_space<vmem>>, vector<1x64x256xf32>
    %32 = vector.shape_cast %31 : vector<1x64x256xf32> to vector<64x256xf32>
    %33 = vector.shape_cast %30 : vector<64x256xf32> to vector<1x64x256xf32>
    tpu.vector_store %arg6[%c0_20, %c0_21, %c0_22], %33 {strides = array<i32>} : memref<1x64x256xf32, #tpu.memory_space<vmem>>, vector<1x64x256xf32>,
    return
  }
  func.func @transform_0(%arg0: i32) -> (i32, i32, i32) {
    %c0_i32 = arith.constant 0 : i32
    %c0_i32_0 = arith.constant 0 : i32
    %c0_i32_1 = arith.constant 0 : i32
    return %arg0, %c0_i32, %c0_i32_0 : i32, i32, i32
  }
  func.func @transform_1(%arg0: i32) -> (i32, i32) {
    %c0_i32 = arith.constant 0 : i32
    %c0_i32_0 = arith.constant 0 : i32
    %c0_i32_1 = arith.constant 0 : i32
    return %c0_i32, %c0_i32_0 : i32, i32
  }
  func.func @transform_2(%arg0: i32) -> (i32, i32) {
    %c0_i32 = arith.constant 0 : i32
    %c0_i32_0 = arith.constant 0 : i32
    %c0_i32_1 = arith.constant 0 : i32
    return %c0_i32, %c0_i32_0 : i32, i32
  }
  func.func @transform_3(%arg0: i32) -> (i32, i32) {
    %c0_i32 = arith.constant 0 : i32
    %c0_i32_0 = arith.constant 0 : i32
    %c0_i32_1 = arith.constant 0 : i32
    return %c0_i32, %c0_i32_0 : i32, i32
  }
  func.func @transform_4(%arg0: i32) -> (i32, i32) {
    %c0_i32 = arith.constant 0 : i32
    %c0_i32_0 = arith.constant 0 : i32
    %c0_i32_1 = arith.constant 0 : i32
    return %c0_i32, %c0_i32_0 : i32, i32
  }
  func.func @transform_5(%arg0: i32) -> (i32, i32, i32) {
    %c0_i32 = arith.constant 0 : i32
    %c0_i32_0 = arith.constant 0 : i32
    %c0_i32_1 = arith.constant 0 : i32
    return %arg0, %c0_i32, %c0_i32_0 : i32, i32, i32
  }
}

</mosaic_0001>

<bundles_post_ra>
// kernel: tpu_custom_call.1
= control target key start
LH: loop header
LB: loop body
LE: loop exit
PB: predicated region body
PF: predicated region fallthrough
CT: control target
= control target key end

     0   :  { %10 = vsyncpa [#allocation3], 0  ;;  %s1326_s0 = inlined_call_operand.hbm [shape: f32[2,64,256], index: 0, kind: input, shape index: {}]   ;;  %s1327_s1 = inlined_call_operand.vmem [shape: f32[4,64], index: 1, kind: input, shape index: {}]   ;;  %s1328_s2 = inlined_call_operand.vmem [shape: f32[4,1], index: 2, kind: input, shape index: {}]   ;;  %s1329_s3 = inlined_call_operand.vmem [shape: f32[64,4], index: 3, kind: input, shape index: {}]   ;;  %s1330_s4 = inlined_call_operand.vmem [shape: f32[64,1], index: 4, kind: input, shape index: {}]   ;;  %s1331_s5 = inlined_call_operand.hbm [shape: f32[2,64,256], index: 5, kind: output, shape index: {}]  }
   0x1   :  { %12 = vsyncpa [#allocation3 + $0x1], 0 }
   0x2   :  { %13 = vsyncpa [#allocation4], 0 }
   0x3   :  { %15 = vsyncpa [#allocation4 + $0x1], 0  ;;  %s1023_s18 = smov 0   ;;  %s1025_s19 = smov 0  }
   0x4   :  { %s1027_s20 = smov 0   ;;  %s1029_s21 = smov 0  }
   0x5 LB: > { %s1044_s22 = sadd.s32 4294967295, %s982_s21   ;;  %s722_s23 = sadd.s32 4294967294, %s982_s21   ;;  %s982_s21 = sphi %s1029_s21, %s1346_s21   ;;  %s978_s20 = sphi %s1027_s20, %s1345_s20   ;;  %s974_s19 = sphi %s1025_s19, %s1344_s19   ;;  %s970_s18 = sphi %s1023_s18, %s1343_s18  }
   0x6   : > { %s1048_s24 = sadd.s32 1, %s982_s21   ;;  %s28_s25 = sadd.s32 1, %s978_s20 }
   0x7   : > { %s25_s26 = ssub.s32 %s982_s21, %s1048_s24  ;;  %p35_p0 = scmp.ne.s32.totalorder %s978_s20, %s974_s19 }
   0x8   : > { %p26_p1 = scmp.eq.s32.totalorder %s25_s26, 0  ;;  %p36_p2 = scmp.eq.s32.totalorder %s982_s21, 0 }
   0x9   : > { %p41_p3 = scmp.ne.s32.totalorder %s974_s19, %s970_s18  ;;  %p42_p4 = scmp.eq.s32.totalorder %s1044_s22, 0 }
   0xa   : > { %s1060_s27 = scalar_select %p26_p1, %s978_s20, %s28_s25  }
   0xb   : > { %p1062_p5 = por %p36_p2, %p35_p0  ;;  %p1066_p6 = por %p42_p4, %p41_p3 }
   0xc   : > { %p149_p7 = scmp.eq.s32.totalorder %s1044_s22, 1  ;;  %p155_p8 = scmp.eq.s32.totalorder %s722_s23, 1 }
   0xd   : > { %s1335_s29 = scalar_select %p1066_p6, 1, 0 }
   0xe   : > { %p811_p10 = scmp.lt.s32.totalorder %s982_s21, 2  ;;  %p1073_p11 = por %p149_p7, %p35_p0 }
   0xf   : > { %p1077_p12 = por %p155_p8, %p41_p3  ;;  %s187_s7 = sand.u32 1, %s978_s20  }
  0x10   : > { %s1336_s30 = scalar_select %p1073_p11, 1, 0 }
  0x11   : > { %s1337_s6 = scalar_select %p1077_p12, 1, 0 }
  0x12   : > { %s746_s8 = sshll.u32 %s982_s21, 11  ;;  %s725_s9 = sshll.u32 %s187_s7, 7 }
  0x13   : > { %s1086_s12 = scalar_lea.hbm %s1326_s0, %s746_s8  ;;  %s191_s13 = scalar_lea.vmem [#allocation2], %s725_s9 }
  0x14   : > { %s198_s14 = sshll.u32 %s191_s13, 4  ;;  %p1090_p13 = pnand %p811_p10, %p1062_p5  ;;  %s1094_s14 = int_to_ptr.vmem [resolvable:$true] %s198_s14 }
  0x15   : > { %s1096_s16 = scalar_lea.sflag [#allocation3], %s187_s7  ;;  %s890_s17 = scalar_lea.hbm %s1086_s12, 2048 }
  0x16   : > { %p891_p0 = scmp.ne.s32.totalorder %s1086_s12, %s890_s17  ;;  %p892_p1 = pneg %p1090_p13 }
  0x17   : > { %s895_s26 = scalar_lea.hbm %s1326_s0, 4096  ;;  %p896_p4 = scmp.lt.s32.totalorder %s1086_s12, %s1326_s0 }
  0x18   : > { %p893_p2 = pnand %p892_p1, %p891_p0  ;;  %p897_p5 = scmp.lt.s32.totalorder %s895_s26, %s890_s17 }
  0x1a   : > { %p894_p3 = pneg %p893_p2  ;;  %p898_p7 = por %p897_p5, %p896_p4 }
  0x1c   : > { %p899_p8 = pnand %p898_p7, %p894_p3 }
  0x1e   : > { %902 = shalt.err (!%p899_p8)
}
  0x1f   : > { %s903_s7 = scalar_lea.vmem %s1094_s14, 2048  ;;  %s984_s9 = smov [#allocation2]  }
  0x20   : > { %p904_p10 = scmp.ne.s32.totalorder %s1094_s14, %s903_s7  ;;  %s908_s10 = sshll.u32 %s984_s9, 4  ;;  %s909_s10 = int_to_ptr.vmem [resolvable:$false] %s908_s10 }
  0x21   : > { %s910_s11 = scalar_lea.vmem %s909_s10, 4096  ;;  %p911_p2 = scmp.lt.s32.totalorder %s1094_s14, %s909_s10 }
  0x22   : > { %p906_p9 = pnand %p904_p10, %p892_p1  ;;  %p912_p12 = scmp.lt.s32.totalorder %s910_s11, %s903_s7 }
  0x24   : > { %p907_p0 = pneg %p906_p9  ;;  %p913_p11 = por %p912_p12, %p911_p2 }
  0x26   : > { %p914_p6 = pnand %p913_p11, %p907_p0 }
  0x28   : > { %917 = shalt.err (!%p914_p6)
}
  0x29   : > { %s985_s13 = smov 256   ;;  %s986_s17 = smov 16  }
  0x2a   : > { %806 = dma.hbm_to_vmem [thread:$0]  (!%p1090_p13), %s1086_s12, 2048, %s1094_s14, %s1096_s16, %s985_s13, %s985_s13, %s986_s17  }
  0x2b   : > { %p728_p9 = scmp.ge.s32.totalorder %s982_s21, 1  ;;  %p206_p1 = scmp.lt.s32.totalorder %s982_s21, 3 }
  0x2d   : > { %p207_p3 = pnand %p728_p9, %p206_p1 }
  0x2e   : > { %s1120_s23 = sand.u32 (!%p207_p3), 1, %s974_s19   ;;  %p1339_p6 = scmp.ne.s32.totalorder (!%p207_p3), %s1335_s29, 0 }
  0x2f   : > { %210 = sbr.rel (%p207_p3) target bundleno = 839 (0x347), region = 40  ;;  %s729_s25 = sshll.u32 (!%p207_p3), %s1120_s23, 7 }
  0x30   : > { %s213_s26 = scalar_lea.sflag (!%p207_p3), [#allocation3], %s1120_s23  ;;  %s216_s28 = scalar_lea.vmem (!%p207_p3), [#allocation2], %s729_s25 }
  0x34   : > { %961 = dma.done.wait (%p1339_p6), %s213_s26, 2048  }
  0x35   : > { %963 = vsyncadd (%p1339_p6), %s213_s26, 4294965248  ;;  %v1130_v0 = vld [vmem:[%s216_s28 + $0x70] sm:$0xff]  ;;  %v1132_v1 = vld [vmem:[%s216_s28 + $0x78] sm:$0xff]  ;;  %v987_v24 = vmov 0.0   ;;  %vm988_vm0 = vmmov 0   ;;  %vm293_vm1 = vcmask 523264  }
  0x36   : > { %v1134_v2 = vld [vmem:[%s216_s28 + $0x60] sm:$0xff]  ;;  %v280_v3 = vadd.f32 %v1132_v1, %v1130_v0  ;;  %v1138_v4 = vld [vmem:[%s216_s28 + $0x68] sm:$0xff]  ;;  %v1140_v5 = vld [vmem:[%s216_s28 + $0x50] sm:$0xff]  ;;  %766 = vmatprep.subr.mxu0 %v987_v24  ;;  %782 = vmatprep.mubr.msk.f32.mxu0 %vm988_vm0, %v987_v24  ;;  %vm389_vm2 = vcmask 31744   ;;  %vm414_vm3 = vcmask 1043456   ;;  %v989_v60 = vmov 0  }
  0x37   : > { %v1142_v6 = vld [vmem:[%s216_s28 + $0x58] sm:$0xff]  ;;  %v1146_v8 = vld [vmem:[%s216_s28 + $0x40] sm:$0xff]  ;;  %v1148_v9 = vld [vmem:[%s216_s28 + $0x48] sm:$0xff]  ;;  %v277_v10 = vadd.f32 %v1138_v4, %v1134_v2  ;;  %853 = vset.pattern.permute.xlu1 %v989_v60  ;;  %852 = vset.pattern.permute.xlu0 %v989_v60  ;;  %s1244_s10 = scalar_lea.vmem [#allocation5], %s729_s25  ;;  %s747_s25 = sshll.u32 %s1044_s22, 11 }
  0x38   : > { %v274_v7 = vadd.f32 %v1142_v6, %v1140_v5  ;;  %281 = vadd.xlane.f32.xlu0 %v280_v3  ;;  %v271_v11 = vadd.f32 %v1148_v9, %v1146_v8  ;;  %v1154_v12 = vld [vmem:[%s216_s28 + $0x30] sm:$0xff]  ;;  %v1156_v13 = vld [vmem:[%s216_s28 + $0x38] sm:$0xff]  ;;  %v1158_v14 = vld [vmem:[%s216_s28 + $0x20] sm:$0xff]  ;;  %s649_s11 = sshll.u32 %s1244_s10, 4  ;;  %s1277_s26 = scalar_lea.hbm %s1331_s5, %s747_s25  ;;  %s1279_s11 = int_to_ptr.vmem [resolvable:$true] %s649_s11 }
  0x39   : > { %v1160_v15 = vld [vmem:[%s216_s28 + $0x28] sm:$0xff]  ;;  %v268_v16 = vadd.f32 %v1156_v13, %v1154_v12  ;;  %v1166_v18 = vld [vmem:[%s216_s28 + $0x10] sm:$0xff]  ;;  %v1168_v19 = vld [vmem:[%s216_s28 + $0x18] sm:$0xff]  ;;  %s636_s22 = scalar_lea.sflag [#allocation4], %s1120_s23  ;;  %p1340_p12 = scmp.ne.s32.totalorder %s1336_s30, 0 }
  0x3a   : > { %275 = vadd.xlane.f32.xlu1 %v274_v7  ;;  %v265_v17 = vadd.f32 %v1160_v15, %v1158_v14  ;;  %v1170_v20 = vld [vmem:[%s216_s28] sm:$0xff]  ;;  %v1172_v21 = vld [vmem:[%s216_s28 + $0x8] sm:$0xff]  ;;  %v262_v22 = vadd.f32 %v1168_v19, %v1166_v18  ;;  %v375_v54 = vld [vmem:[%s1329_s3 + $0x10] sm:$0xff]  ;;  %s918_s28 = scalar_lea.vmem %s1279_s11, 2048  ;;  %s990_s29 = smov [#allocation5]  }
  0x3b   : > { %v259_v23 = vadd.f32 %v1172_v21, %v1170_v20  ;;  %v291_v41 = vld [vmem:[%s1327_s1] sm:$0xf]  ;;  %v374_v53 = vld [vmem:[%s1329_s3 + $0x8] sm:$0xff]  ;;  %v376_v55 = vld [vmem:[%s1329_s3 + $0x18] sm:$0xff]  ;;  %p919_p11 = scmp.ne.s32.totalorder %s1279_s11, %s918_s28  ;;  %s922_s12 = sshll.u32 %s990_s29, 4  ;;  %s923_s12 = int_to_ptr.vmem [resolvable:$false] %s922_s12 }
  0x3c   : > { %278 = vadd.xlane.f32.xlu0 %v277_v10  ;;  %v373_v42 = vld [vmem:[%s1329_s3] sm:$0xff]  ;;  %v378_v57 = vld [vmem:[%s1329_s3 + $0x28] sm:$0xff]  ;;  %v379_v58 = vld [vmem:[%s1329_s3 + $0x30] sm:$0xff]  ;;  %s924_s14 = scalar_lea.vmem %s923_s12, 4096  ;;  %p925_p5 = scmp.lt.s32.totalorder %s1279_s11, %s923_s12 }
  0x3d   : > { %787 = vmatprep.mubr.msk.f32.mxu1 %vm389_vm2, %v373_v42  ;;  %v292_v43 = vld [vmem:[%s1328_s2] sm:$0xf]  ;;  %v380_v59 = vld [vmem:[%s1329_s3 + $0x38] sm:$0xff]  ;;  %v382_v61 = vld [vmem:[%s1330_s4 + $0x8] sm:$0xff]  ;;  %p920_p13 = pnand %p919_p11, %p1340_p12  ;;  %p926_p7 = scmp.lt.s32.totalorder %s924_s14, %s918_s28 }
  0x3e   : > { %272 = vadd.xlane.f32.xlu1 %v271_v11  ;;  %v377_v56 = vld [vmem:[%s1329_s3 + $0x20] sm:$0xff]  ;;  %v384_v10 = vld [vmem:[%s1330_s4 + $0x18] sm:$0xff]  ;;  %v387_v42 = vld [vmem:[%s1330_s4 + $0x30] sm:$0xff] }
  0x3f   : > { %v381_v63 = vld [vmem:[%s1330_s4] sm:$0xff]  ;;  %p921_p4 = pneg %p920_p13  ;;  %p927_p8 = por %p926_p7, %p925_p5 }
  0x40   : > { %269 = vadd.xlane.f32.xlu0 %v268_v16 }
  0x41   : > { %p928_p10 = pnand %p927_p8, %p921_p4 }
  0x42   : > { %266 = vadd.xlane.f32.xlu1 %v265_v17 }
  0x44   : > { %263 = vadd.xlane.f32.xlu0 %v262_v22  ;;  %v383_v22 = vld [vmem:[%s1330_s4 + $0x10] sm:$0xff] }
  0x46   : > { %260 = vadd.xlane.f32.xlu1 %v259_v23 }
  0xc1   : > { %v282_v25 = vpop.xlane.xlu0 %281 }
  0xc2   : > { %v290_v26 = vmul.f32 0.00390625, %v282_v25 }
  0xc3   : > { %v276_v27 = vpop.xlane.xlu1 %275 }
  0xc4   : > { %767 = vmatpush3.msra.mxu0 %v290_v26  ;;  %v288_v31 = vmul.f32 0.00390625, %v276_v27  ;;  %v386_v27 = vld [vmem:[%s1330_s4 + $0x28] sm:$0xff] }
  0xc5   : > { %v279_v28 = vpop.xlane.xlu0 %278  ;;  %768 = vmatprep.subr.mxu0 %v987_v24 }
  0xc6   : > { %v289_v29 = vmul.f32 0.00390625, %v279_v28 }
  0xc7   : > { %v273_v30 = vpop.xlane.xlu1 %272 }
  0xc8   : > { %769 = vmatpush3.msra.mxu0 %v289_v29  ;;  %v287_v32 = vmul.f32 0.00390625, %v273_v30 }
  0xc9   : > { %770 = vmatprep.subr.mxu0 %v987_v24  ;;  %v270_v33 = vpop.xlane.xlu0 %269 }
  0xca   : > { %771 = vmatpush3.msra.mxu0 %v288_v31  ;;  %v286_v34 = vmul.f32 0.00390625, %v270_v33 }
  0xcb   : > { %v267_v35 = vpop.xlane.xlu1 %266  ;;  %772 = vmatprep.subr.mxu0 %v987_v24 }
  0xcc   : > { %773 = vmatpush3.msra.mxu0 %v287_v32  ;;  %v285_v36 = vmul.f32 0.00390625, %v267_v35  ;;  %v385_v32 = vld [vmem:[%s1330_s4 + $0x20] sm:$0xff] }
  0xcd   : > { %774 = vmatprep.subr.mxu0 %v987_v24  ;;  %v264_v37 = vpop.xlane.xlu0 %263 }
  0xce   : > { %775 = vmatpush3.msra.mxu0 %v286_v34  ;;  %v284_v38 = vmul.f32 0.00390625, %v264_v37 }
  0xcf   : > { %v261_v39 = vpop.xlane.xlu1 %260  ;;  %776 = vmatprep.subr.mxu0 %v987_v24 }
  0xd0   : > { %777 = vmatpush3.msra.mxu0 %v285_v36  ;;  %v283_v40 = vmul.f32 0.00390625, %v261_v39 }
  0xd1   : > { %778 = vmatprep.subr.mxu0 %v987_v24 }
  0xd2   : > { %779 = vmatpush3.msra.mxu0 %v284_v38 }
  0xd3   : > { %780 = vmatprep.subr.mxu0 %v987_v24 }
  0xd4   : > { %781 = vmatpush3.msra.mxu0 %v283_v40  ;;  %v388_v40 = vld [vmem:[%s1330_s4 + $0x38] sm:$0xff] }
  0xd5   : > { %783 = vmatmul.mubr.msk.f32.vlgmr.msra.gmra.mxu0 %vm293_vm1, %v291_v41 }
 0x195   : > { %v363_v44 = vpop.f32.mrf.mxu0 }
 0x196   : > { %v364_v45 = vadd.f32 %v363_v44, %v292_v43 }
 0x197   : > { %v784_v46 = vpop.f32.mrf.mxu0 }
 0x198   : > { %v367_v47 = vsub.f32 0.0, %v364_v45 }
 0x19a   : > { %v368_v48 = vmul.f32 1.442695, %v367_v47 }
 0x19c   : > { %854 = vpow2.f32 %v368_v48 }
 0x1a9   : > { %v855_v49 = vpop.eup %854 }
 0x1aa   : > { %v370_v50 = vadd.f32 1.0, %v855_v49 }
 0x1ac   : > { %856 = vrcp.f32 %v370_v50 }
 0x1b9   : > { %v857_v51 = vpop.eup %856 }
 0x1ba   : > { %v372_v52 = vmul.f32 %v857_v51, %v364_v45 }
 0x1bc   : > { %785 = vmatprep.subr.msk.mxu1 %vm414_vm3, %v372_v52 }
 0x1bd   : > { %786 = vmatpush3.msk.msra.mxu1 %vm414_vm3, %v372_v52 }
 0x1be   : > { %788 = vmatmul.mubr.msk.f32.vlgmr.msra.gmra.mxu1 %vm389_vm2, %v374_v53 }
 0x1bf   : > { %790 = vmatprep.mubr.msk.f32.mxu1 %vm389_vm2, %v375_v54 }
 0x1c2   : > { %791 = vmatmul.mubr.msk.f32.gmra.mxu1 %vm389_vm2, %v376_v55 }
 0x1c3   : > { %793 = vmatprep.mubr.msk.f32.mxu1 %vm389_vm2, %v377_v56 }
 0x1c6   : > { %794 = vmatmul.mubr.msk.f32.gmra.mxu1 %vm389_vm2, %v378_v57 }
 0x1c7   : > { %796 = vmatprep.mubr.msk.f32.mxu1 %vm389_vm2, %v379_v58 }
 0x1ca   : > { %797 = vmatmul.mubr.msk.f32.gmra.mxu1 %vm389_vm2, %v380_v59 }
 0x27e   : > { %v789_v62 = vpop.f32.mrf.mxu1 }
 0x27f   : > { %v490_v3 = vadd.f32 %v789_v62, %v382_v61 }
 0x280   : > { %v484_v7 = vpop.f32.mrf.mxu1 }
 0x281   : > { %v524_v11 = vsub.f32 0.0, %v490_v3  ;;  %v485_v16 = vadd.f32 %v484_v7, %v381_v63 }
 0x282   : > { %v792_v17 = vpop.f32.mrf.mxu1 }
 0x283   : > { %v533_v23 = vmul.f32 1.442695, %v524_v11  ;;  %v523_v24 = vsub.f32 0.0, %v485_v16  ;;  %v500_v25 = vadd.f32 %v792_v17, %v384_v10 }
 0x284   : > { %v494_v26 = vpop.f32.mrf.mxu1 }
 0x285   : > { %858 = vpow2.f32 %v533_v23  ;;  %v531_v28 = vmul.f32 1.442695, %v523_v24  ;;  %v526_v29 = vsub.f32 0.0, %v500_v25  ;;  %v495_v30 = vadd.f32 %v494_v26, %v383_v22 }
 0x286   : > { %v795_v31 = vpop.f32.mrf.mxu1 }
 0x287   : > { %860 = vpow2.f32 %v531_v28  ;;  %v537_v33 = vmul.f32 1.442695, %v526_v29  ;;  %v525_v34 = vsub.f32 0.0, %v495_v30  ;;  %v510_v35 = vadd.f32 %v795_v31, %v386_v27 }
 0x288   : > { %v504_v36 = vpop.f32.mrf.mxu1 }
 0x289   : > { %862 = vpow2.f32 %v537_v33  ;;  %v535_v37 = vmul.f32 1.442695, %v525_v34  ;;  %v528_v38 = vsub.f32 0.0, %v510_v35  ;;  %v505_v39 = vadd.f32 %v504_v36, %v385_v32 }
 0x28a   : > { %v798_v41 = vpop.f32.mrf.mxu1 }
 0x28b   : > { %864 = vpow2.f32 %v535_v37  ;;  %v541_v43 = vmul.f32 1.442695, %v528_v38  ;;  %v527_v44 = vsub.f32 0.0, %v505_v39  ;;  %v520_v45 = vadd.f32 %v798_v41, %v388_v40 }
 0x28c   : > { %v514_v46 = vpop.f32.mrf.mxu1 }
 0x28d   : > { %866 = vpow2.f32 %v541_v43  ;;  %v539_v47 = vmul.f32 1.442695, %v527_v44  ;;  %v515_v48 = vadd.f32 %v514_v46, %v387_v42  ;;  %v530_v50 = vsub.f32 0.0, %v520_v45 }
 0x28f   : > { %v529_v49 = vsub.f32 0.0, %v515_v48  ;;  %868 = vpow2.f32 %v539_v47  ;;  %v545_v55 = vmul.f32 1.442695, %v530_v50 }
 0x291   : > { %v543_v51 = vmul.f32 1.442695, %v529_v49 }
 0x292   : > { %v859_v52 = vpop.eup %858 }
 0x293   : > { %v548_v53 = vadd.f32 1.0, %v859_v52  ;;  %870 = vpow2.f32 %v543_v51 }
 0x294   : > { %v861_v54 = vpop.eup %860 }
 0x295   : > { %872 = vrcp.f32 %v548_v53  ;;  %v547_v56 = vadd.f32 1.0, %v861_v54 }
 0x296   : > { %v863_v57 = vpop.eup %862 }
 0x297   : > { %874 = vrcp.f32 %v547_v56  ;;  %v550_v58 = vadd.f32 1.0, %v863_v57 }
 0x298   : > { %v865_v59 = vpop.eup %864  ;;  %876 = vpow2.f32 %v545_v55 }
 0x299   : > { %878 = vrcp.f32 %v550_v58  ;;  %v549_v60 = vadd.f32 1.0, %v865_v59 }
 0x29a   : > { %v867_v61 = vpop.eup %866 }
 0x29b   : > { %v552_v62 = vadd.f32 1.0, %v867_v61  ;;  %880 = vrcp.f32 %v549_v60 }
 0x29c   : > { %v869_v63 = vpop.eup %868 }
 0x29d   : > { %882 = vrcp.f32 %v552_v62  ;;  %v551_v7 = vadd.f32 1.0, %v869_v63 }
 0x29f   : > { %884 = vrcp.f32 %v551_v7 }
 0x2a0   : > { %v871_v3 = vpop.eup %870 }
 0x2a1   : > { %v553_v17 = vadd.f32 1.0, %v871_v3 }
 0x2a2   : > { %v873_v10 = vpop.eup %872 }
 0x2a3   : > { %570 = vperm.xlu1 %853, %v873_v10   ;;  %886 = vrcp.f32 %v553_v17 }
 0x2a4   : > { %v875_v11 = vpop.eup %874 }
 0x2a5   : > { %v877_v16 = vpop.eup %876  ;;  %565 = vperm.xlu0 %852, %v875_v11  }
 0x2a6   : > { %v879_v22 = vpop.eup %878  ;;  %v554_v23 = vadd.f32 1.0, %v877_v16 }
 0x2a7   : > { %580 = vperm.xlu1 %853, %v879_v22  }
 0x2a8   : > { %v881_v24 = vpop.eup %880  ;;  %888 = vrcp.f32 %v554_v23 }
 0x2aa   : > { %v883_v25 = vpop.eup %882 }
 0x2ab   : > { %575 = vperm.xlu1 %853, %v881_v24  }
 0x2ac   : > { %v885_v26 = vpop.eup %884 }
 0x2af   : > { %590 = vperm.xlu1 %853, %v883_v25  }
 0x2b0   : > { %v887_v27 = vpop.eup %886 }
 0x2b3   : > { %585 = vperm.xlu1 %853, %v885_v26  }
 0x2b5   : > { %v889_v28 = vpop.eup %888 }
 0x2b7   : > { %595 = vperm.xlu1 %853, %v887_v27  }
 0x2bb   : > { %600 = vperm.xlu1 %853, %v889_v28  }
 0x31e   : > { %v571_v29 = vpop.permute.xlu1 %570 }
 0x31f   : > { %v605_v30 = vmul.f32 %v571_v29, %v1166_v18  ;;  %v606_v31 = vmul.f32 %v571_v29, %v1168_v19 }
 0x320   : > { %v566_v32 = vpop.permute.xlu0 %565 }
 0x321   : > { %621 = vst [vmem:[%s1244_s10 + $0x10] sm:$0xff] %v605_v30  ;;  %622 = vst [vmem:[%s1244_s10 + $0x18] sm:$0xff] %v606_v31  ;;  %v603_v33 = vmul.f32 %v566_v32, %v1170_v20  ;;  %v604_v18 = vmul.f32 %v566_v32, %v1172_v21 }
 0x322   : > { %v581_v19 = vpop.permute.xlu1 %580 }
 0x323   : > { %619 = vst [vmem:[%s1244_s10] sm:$0xff] %v603_v33  ;;  %620 = vst [vmem:[%s1244_s10 + $0x8] sm:$0xff] %v604_v18  ;;  %v609_v34 = vmul.f32 %v581_v19, %v1154_v12  ;;  %v610_v35 = vmul.f32 %v581_v19, %v1156_v13 }
 0x325   : > { %625 = vst [vmem:[%s1244_s10 + $0x30] sm:$0xff] %v609_v34  ;;  %626 = vst [vmem:[%s1244_s10 + $0x38] sm:$0xff] %v610_v35 }
 0x326   : > { %v576_v36 = vpop.permute.xlu1 %575 }
 0x327   : > { %v607_v37 = vmul.f32 %v576_v36, %v1158_v14  ;;  %v608_v20 = vmul.f32 %v576_v36, %v1160_v15 }
 0x329   : > { %623 = vst [vmem:[%s1244_s10 + $0x20] sm:$0xff] %v607_v37  ;;  %624 = vst [vmem:[%s1244_s10 + $0x28] sm:$0xff] %v608_v20 }
 0x32a   : > { %v591_v21 = vpop.permute.xlu1 %590 }
 0x32b   : > { %v613_v12 = vmul.f32 %v591_v21, %v1140_v5  ;;  %v614_v13 = vmul.f32 %v591_v21, %v1142_v6 }
 0x32d   : > { %629 = vst [vmem:[%s1244_s10 + $0x50] sm:$0xff] %v613_v12  ;;  %630 = vst [vmem:[%s1244_s10 + $0x58] sm:$0xff] %v614_v13 }
 0x32e   : > { %v586_v38 = vpop.permute.xlu1 %585 }
 0x32f   : > { %v611_v39 = vmul.f32 %v586_v38, %v1146_v8  ;;  %v612_v14 = vmul.f32 %v586_v38, %v1148_v9 }
 0x331   : > { %627 = vst [vmem:[%s1244_s10 + $0x40] sm:$0xff] %v611_v39  ;;  %628 = vst [vmem:[%s1244_s10 + $0x48] sm:$0xff] %v612_v14 }
 0x332   : > { %v596_v15 = vpop.permute.xlu1 %595 }
 0x333   : > { %v615_v40 = vmul.f32 %v596_v15, %v1134_v2  ;;  %v616_v5 = vmul.f32 %v596_v15, %v1138_v4 }
 0x335   : > { %631 = vst [vmem:[%s1244_s10 + $0x60] sm:$0xff] %v615_v40  ;;  %632 = vst [vmem:[%s1244_s10 + $0x68] sm:$0xff] %v616_v5 }
 0x336   : > { %v601_v6 = vpop.permute.xlu1 %600 }
 0x337   : > { %v617_v2 = vmul.f32 %v601_v6, %v1130_v0  ;;  %v618_v8 = vmul.f32 %v601_v6, %v1132_v1 }
 0x339   : > { %633 = vst [vmem:[%s1244_s10 + $0x70] sm:$0xff] %v617_v2  ;;  %634 = vst [vmem:[%s1244_s10 + $0x78] sm:$0xff] %v618_v8 }
 0x33a   : > { %931 = shalt.err (!%p928_p10)
}
 0x33b   : > { %s932_s15 = scalar_lea.hbm %s1277_s26, 2048  ;;  %s936_s7 = scalar_lea.hbm %s1331_s5, 4096 }
 0x33c   : > { %p933_p0 = scmp.ne.s32.totalorder %s1277_s26, %s932_s15  ;;  %p937_p1 = scmp.lt.s32.totalorder %s1277_s26, %s1331_s5 }
 0x33d   : > { %p938_p3 = scmp.lt.s32.totalorder %s936_s7, %s932_s15 }
 0x33e   : > { %p934_p2 = pnand %p933_p0, %p1340_p12 }
 0x33f   : > { %p939_p6 = por %p938_p3, %p937_p1 }
 0x340   : > { %p935_p9 = pneg %p934_p2 }
 0x342   : > { %p940_p11 = pnand %p939_p6, %p935_p9 }
 0x344   : > { %943 = shalt.err (!%p940_p11)
}
 0x345   : > { %s991_s25 = smov 256   ;;  %s992_s13 = smov 16  }
 0x346   : > { %801 = dma.vmem_to_hbm [thread:$0]  (%p1340_p12), %s1279_s11, 2048, %s1277_s26, %s636_s22, %s991_s25, %s991_s25, %s992_s13  }
 0x347 PF: > { %s664_s17 = sand.u32 1, %s970_s18   ;;  %p1341_p13 = scmp.ne.s32.totalorder %s1337_s6, 0 }
 0x348   : > { %p1342_p4 = scmp.ge.s32.totalorder %s982_s21, 2  ;;  %s665_s28 = scalar_lea.sflag [#allocation4], %s664_s17 }
 0x34a   : > { %p808_p5 = pnand %p1342_p4, %p1341_p13 }
 0x34c   : > { %p809_p7 = pneg %p808_p5 }
 0x34e   : > { %965 = dma.done.wait (%p809_p7), %s665_s28, 2048  }
 0x34f   : > { %967 = vsyncadd (%p809_p7), %s665_s28, 4294965248  ;;  %p18_p8 = scmp.ge.s32.totalorder %s1048_s24, 4   ;;  %s1343_s18 = smov %s974_s19 }
 0x350   : > { %s1344_s19 = smov %s978_s20  ;;  %s1345_s20 = smov %s1060_s27 }
 0x351   : > { %s1346_s21 = smov %s1048_s24  ;;  %20 = sbr.rel (!%p18_p8) target bundleno = 5 (0x5), region = 85 }
 0x356   :  { %670 = vsyncpa [#allocation3], 1 }
 0x357   :  { %672 = vsyncpa [#allocation3 + $0x1], 1 }
 0x358   :  { %673 = vsyncpa [#allocation4], 1 }
 0x359   :  { %675 = vsyncpa [#allocation4 + $0x1], 1 }

</bundles_post_ra>
